<compile_context>
chip_gen: v6e
topology: v6e:2x2x1
jax: 0.10.0
libtpu: 0.0.40
codegen_flags: <defaults>
</compile_context>

<pallas_src>
import functools

import jax
import jax.numpy as jnp
from jax.experimental import pallas as pl
from jax.experimental.pallas import tpu as pltpu

IN_DIM = 3
HIDDEN_DIM = 64
OUT_DIM = 3
FEAT_PAD = 8          # pad the 3-wide feature dims up to one full sublane tile


def _round_up(x, m):
    return ((x + m - 1) // m) * m


def mlp_kernel(x_ref, w1_ref, b1_ref, w2_ref, b2_ref, w3_ref, b3_ref, o_ref):
    """Feature-major (features, TILE_B): batch on the 128-lane axis.

    Matmuls accumulate in f32 (preferred_element_type); tanh runs in the
    activation dtype (bf16 on v6e/v7x for EUP throughput, f32 on v5e).
    """
    act_dtype = x_ref.dtype
    f32 = jnp.float32
    x = x_ref[...]                                                    # (8, TB)
    z1 = jnp.dot(w1_ref[...], x, preferred_element_type=f32) + b1_ref[...]
    h1 = jnp.tanh(z1.astype(act_dtype))                               # (64, TB)
    z2 = jnp.dot(w2_ref[...], h1, preferred_element_type=f32) + b2_ref[...]
    h2 = jnp.tanh(z2.astype(act_dtype))                               # (64, TB)
    o_ref[...] = (jnp.dot(w3_ref[...], h2, preferred_element_type=f32)
                  + b3_ref[...]).astype(o_ref.dtype)                  # (8, TB)


@functools.partial(jax.jit, static_argnames=("tile_b", "use_bf16"))
def feedforward_forward(x, params, tile_b=8192, use_bf16=False):
    """x: (B, 3) float32 -> (B, 3) float32. Weights in PyTorch (out, in) layout."""
    B = x.shape[0]
    act_dtype = jnp.bfloat16 if use_bf16 else jnp.float32

    # ---- batch tile selection: lane-aligned, amortizes per-step overhead,
    # ---- and split into >=2 tiles when possible (v7x has 2 TensorCores).
    tile_b = max(128, _round_up(min(tile_b, _round_up(max(B, 1), 128)), 128))
    Bp = _round_up(max(B, 1), tile_b)
    if Bp // tile_b < 2 and tile_b >= 256:
        tile_b = _round_up((Bp + 1) // 2, 128)
        Bp = _round_up(max(B, 1), tile_b)
    grid = (Bp // tile_b,)

    # ---- feature-major, sublane-padded input (8, Bp): rows IN_DIM..7 are zero.
    # Built as one fused scatter-into-zeros under jit (single HBM pass).
    xp = jnp.zeros((FEAT_PAD, Bp), act_dtype).at[:IN_DIM, :B].set(
        x.astype(act_dtype).T)

    # ---- weights: cast once in the wrapper; pad the 3-wide dims to 8.
    w_dtype = act_dtype
    w1 = jnp.zeros((HIDDEN_DIM, FEAT_PAD), w_dtype).at[:, :IN_DIM].set(
        params['w1'].astype(w_dtype))
    w2 = params['w2'].astype(w_dtype)
    w3 = jnp.zeros((FEAT_PAD, HIDDEN_DIM), w_dtype).at[:OUT_DIM, :].set(
        params['w3'].astype(w_dtype))
    # Biases stay f32: they are added to the f32 MXU accumulators.
    b1 = params['b1'].astype(jnp.float32).reshape(HIDDEN_DIM, 1)
    b2 = params['b2'].astype(jnp.float32).reshape(HIDDEN_DIM, 1)
    b3 = jnp.zeros((FEAT_PAD, 1), jnp.float32).at[:OUT_DIM, 0].set(
        params['b3'].astype(jnp.float32))

    itemsize = jnp.dtype(act_dtype).itemsize
    cost = pl.CostEstimate(
        flops=2 * Bp * (FEAT_PAD * HIDDEN_DIM
                        + HIDDEN_DIM * HIDDEN_DIM
                        + HIDDEN_DIM * FEAT_PAD),
        transcendentals=2 * HIDDEN_DIM * Bp,
        bytes_accessed=(FEAT_PAD * Bp * itemsize                 # x slab in
                        + FEAT_PAD * Bp * 4                      # out slab
                        + (2 * FEAT_PAD * HIDDEN_DIM
                           + HIDDEN_DIM * HIDDEN_DIM) * itemsize  # weights
                        + (2 * HIDDEN_DIM + FEAT_PAD) * 4))       # biases

    out_t = pl.pallas_call(
        mlp_kernel,
        out_shape=jax.ShapeDtypeStruct((FEAT_PAD, Bp), jnp.float32),
        grid_spec=pltpu.PrefetchScalarGridSpec(
            num_scalar_prefetch=0,
            grid=grid,
            in_specs=[
                # activations: tiled over the batch (lane) axis
                pl.BlockSpec((FEAT_PAD, tile_b), lambda i: (0, i)),
                # weights / biases: full-array blocks, resident across all tiles
                pl.BlockSpec((HIDDEN_DIM, FEAT_PAD), lambda i: (0, 0)),
                pl.BlockSpec((HIDDEN_DIM, 1), lambda i: (0, 0)),
                pl.BlockSpec((HIDDEN_DIM, HIDDEN_DIM), lambda i: (0, 0)),
                pl.BlockSpec((HIDDEN_DIM, 1), lambda i: (0, 0)),
                pl.BlockSpec((FEAT_PAD, HIDDEN_DIM), lambda i: (0, 0)),
                pl.BlockSpec((FEAT_PAD, 1), lambda i: (0, 0)),
            ],
            out_specs=pl.BlockSpec((FEAT_PAD, tile_b), lambda i: (0, i)),
        ),
        compiler_params=pltpu.CompilerParams(
            dimension_semantics=("parallel",),
            vmem_limit_bytes=32 * 1024 * 1024),
        cost_estimate=cost,
    )(xp, w1, b1, w2, b2, w3, b3)

    # Slice the padded feature rows / padded batch and return batch-major.
    return out_t[:OUT_DIM, :B].T                                      # (B, 3)


def feedforward_ref(x, p):
    # Pure-JAX reference mirroring the PyTorch forward (nn.Linear: x @ W.T + b).
    h1 = jnp.tanh(x @ p['w1'].T + p['b1'])
    h2 = jnp.tanh(h1 @ p['w2'].T + p['b2'])
    return h2 @ p['w3'].T + p['b3']


def init_params(key):
    # PyTorch nn.Linear default init: U(-1/sqrt(fan_in), 1/sqrt(fan_in)).
    ks = jax.random.split(key, 6)

    def uniform(k, shape, fan_in):
        bound = float(fan_in) ** -0.5
        return jax.random.uniform(k, shape, jnp.float32, -bound, bound)

    return {
        'w1': uniform(ks[0], (HIDDEN_DIM, IN_DIM), IN_DIM),
        'b1': uniform(ks[1], (HIDDEN_DIM,), IN_DIM),
        'w2': uniform(ks[2], (HIDDEN_DIM, HIDDEN_DIM), HIDDEN_DIM),
        'b2': uniform(ks[3], (HIDDEN_DIM,), HIDDEN_DIM),
        'w3': uniform(ks[4], (OUT_DIM, HIDDEN_DIM), HIDDEN_DIM),
        'b3': uniform(ks[5], (OUT_DIM,), HIDDEN_DIM),
    }


if __name__ == "__main__":
    key = jax.random.PRNGKey(0)
    k_param, k_x1, k_x2 = jax.random.split(key, 3)
    params = init_params(k_param)

    # Small shape consistent with the module (batch=2, in_dim=3), f32 path.
    x_small = jax.random.normal(k_x1, (2, IN_DIM), jnp.float32)
    out = jax.block_until_ready(feedforward_forward(x_small, params))
    ref = feedforward_ref(x_small, params)
    assert out.shape == (2, OUT_DIM), out.shape
    assert jnp.allclose(out, ref, atol=1e-5, rtol=1e-5), (out, ref)

    # Ragged batch exercising the multi-tile grid + batch padding, f32 path.
    x_big = jax.random.normal(k_x2, (300, IN_DIM), jnp.float32)
    out_big = jax.block_until_ready(
        feedforward_forward(x_big, params, tile_b=256))
    ref_big = feedforward_ref(x_big, params)
    assert out_big.shape == (300, OUT_DIM), out_big.shape
    assert jnp.allclose(out_big, ref_big, atol=1e-5, rtol=1e-5)

    # bf16-activation fast path (the v6e/v7x configuration); looser tolerance.
    out_bf16 = jax.block_until_ready(
        feedforward_forward(x_big, params, use_bf16=True))
    assert out_bf16.shape == (300, OUT_DIM), out_bf16.shape
    assert jnp.allclose(out_bf16, ref_big, atol=5e-2, rtol=5e-2)

    print("KERNEL_OK")
</pallas_src>

<mosaic_0001>
module attributes {stable_mosaic.version = 11 : i64} {
  func.func @mlp_kernel(%arg0: i32, %arg1: memref<8x128xf32, #tpu.memory_space<vmem>>, %arg2: memref<64x8xf32, #tpu.memory_space<vmem>>, %arg3: memref<64x1xf32, #tpu.memory_space<vmem>>, %arg4: memref<64x64xf32, #tpu.memory_space<vmem>>, %arg5: memref<64x1xf32, #tpu.memory_space<vmem>>, %arg6: memref<8x64xf32, #tpu.memory_space<vmem>>, %arg7: memref<8x1xf32, #tpu.memory_space<vmem>>, %arg8: memref<8x128xf32, #tpu.memory_space<vmem>>) attributes {dimension_semantics = [#tpu.dimension_semantics<parallel>], iteration_bounds = array<i64: 1>, scalar_prefetch = 0 : i64, scratch_operands = 0 : i64, tpu.core_type = #tpu.core_type<tc>, window_params = [{transform_indices = @transform_0, window_bounds = array<i64: 8, 128>}, {pipeline_mode = #tpu.pipeline_mode<synchronous>, transform_indices = @transform_1, window_bounds = array<i64: 64, 8>}, {pipeline_mode = #tpu.pipeline_mode<synchronous>, transform_indices = @transform_2, window_bounds = array<i64: 64, 1>}, {pipeline_mode = #tpu.pipeline_mode<synchronous>, transform_indices = @transform_3, window_bounds = array<i64: 64, 64>}, {pipeline_mode = #tpu.pipeline_mode<synchronous>, transform_indices = @transform_4, window_bounds = array<i64: 64, 1>}, {pipeline_mode = #tpu.pipeline_mode<synchronous>, transform_indices = @transform_5, window_bounds = array<i64: 8, 64>}, {pipeline_mode = #tpu.pipeline_mode<synchronous>, transform_indices = @transform_6, window_bounds = array<i64: 8, 1>}, {transform_indices = @transform_7, window_bounds = array<i64: 8, 128>}]} {
    %c0 = arith.constant 0 : index
    %c0_0 = arith.constant 0 : index
    %0 = vector.load %arg1[%c0, %c0_0] : memref<8x128xf32, #tpu.memory_space<vmem>>, vector<8x128xf32>
    %c0_1 = arith.constant 0 : index
    %c0_2 = arith.constant 0 : index
    %1 = vector.load %arg2[%c0_1, %c0_2] : memref<64x8xf32, #tpu.memory_space<vmem>>, vector<64x8xf32>
    %cst = arith.constant dense<0.000000e+00> : vector<64x128xf32>
    %2 = tpu.matmul %1, %0, %cst {dimension_numbers = #tpu.dot_dimension_numbers<[1], [0], [0], [1], [0, 0, 1, 1], [], []>} : vector<64x8xf32>, vector<8x128xf32>, vector<64x128xf32> -> vector<64x128xf32>
    %c0_3 = arith.constant 0 : index
    %c0_4 = arith.constant 0 : index
    %3 = vector.load %arg3[%c0_3, %c0_4] : memref<64x1xf32, #tpu.memory_space<vmem>>, vector<64x1xf32>
    %4 = vector.broadcast %3 : vector<64x1xf32> to vector<64x128xf32>
    %5 = arith.addf %2, %4 : vector<64x128xf32>
    %6 = math.tanh %5 : vector<64x128xf32>
    %c0_5 = arith.constant 0 : index
    %c0_6 = arith.constant 0 : index
    %7 = vector.load %arg4[%c0_5, %c0_6] : memref<64x64xf32, #tpu.memory_space<vmem>>, vector<64x64xf32>
    %cst_7 = arith.constant dense<0.000000e+00> : vector<64x128xf32>
    %8 = tpu.matmul %7, %6, %cst_7 {dimension_numbers = #tpu.dot_dimension_numbers<[1], [0], [0], [1], [0, 0, 1, 1], [], []>} : vector<64x64xf32>, vector<64x128xf32>, vector<64x128xf32> -> vector<64x128xf32>
    %c0_8 = arith.constant 0 : index
    %c0_9 = arith.constant 0 : index
    %9 = vector.load %arg5[%c0_8, %c0_9] : memref<64x1xf32, #tpu.memory_space<vmem>>, vector<64x1xf32>
    %10 = vector.broadcast %9 : vector<64x1xf32> to vector<64x128xf32>
    %11 = arith.addf %8, %10 : vector<64x128xf32>
    %12 = math.tanh %11 : vector<64x128xf32>
    %c0_10 = arith.constant 0 : index
    %c0_11 = arith.constant 0 : index
    %13 = vector.load %arg6[%c0_10, %c0_11] : memref<8x64xf32, #tpu.memory_space<vmem>>, vector<8x64xf32>
    %cst_12 = arith.constant dense<0.000000e+00> : vector<8x128xf32>
    %14 = tpu.matmul %13, %12, %cst_12 {dimension_numbers = #tpu.dot_dimension_numbers<[1], [0], [0], [1], [0, 0, 1, 1], [], []>} : vector<8x64xf32>, vector<64x128xf32>, vector<8x128xf32> -> vector<8x128xf32>
    %c0_13 = arith.constant 0 : index
    %c0_14 = arith.constant 0 : index
    %15 = vector.load %arg7[%c0_13, %c0_14] : memref<8x1xf32, #tpu.memory_space<vmem>>, vector<8x1xf32>
    %16 = vector.broadcast %15 : vector<8x1xf32> to vector<8x128xf32>
    %17 = arith.addf %14, %16 : vector<8x128xf32>
    %c0_15 = arith.constant 0 : index
    %c0_16 = arith.constant 0 : index
    %18 = vector.load %arg8[%c0_15, %c0_16] : memref<8x128xf32, #tpu.memory_space<vmem>>, vector<8x128xf32>
    tpu.vector_store %arg8[%c0_15, %c0_16], %17 {strides = array<i32>} : memref<8x128xf32, #tpu.memory_space<vmem>>, vector<8x128xf32>,
    return
  }
  func.func @transform_0(%arg0: i32) -> (i32, i32) {
    %c0_i32 = arith.constant 0 : i32
    %c0_i32_0 = arith.constant 0 : i32
    return %c0_i32, %arg0 : i32, i32
  }
  func.func @transform_1(%arg0: i32) -> (i32, i32) {
    %c0_i32 = arith.constant 0 : i32
    %c0_i32_0 = arith.constant 0 : i32
    %c0_i32_1 = arith.constant 0 : i32
    return %c0_i32, %c0_i32_0 : i32, i32
  }
  func.func @transform_2(%arg0: i32) -> (i32, i32) {
    %c0_i32 = arith.constant 0 : i32
    %c0_i32_0 = arith.constant 0 : i32
    %c0_i32_1 = arith.constant 0 : i32
    return %c0_i32, %c0_i32_0 : i32, i32
  }
  func.func @transform_3(%arg0: i32) -> (i32, i32) {
    %c0_i32 = arith.constant 0 : i32
    %c0_i32_0 = arith.constant 0 : i32
    %c0_i32_1 = arith.constant 0 : i32
    return %c0_i32, %c0_i32_0 : i32, i32
  }
  func.func @transform_4(%arg0: i32) -> (i32, i32) {
    %c0_i32 = arith.constant 0 : i32
    %c0_i32_0 = arith.constant 0 : i32
    %c0_i32_1 = arith.constant 0 : i32
    return %c0_i32, %c0_i32_0 : i32, i32
  }
  func.func @transform_5(%arg0: i32) -> (i32, i32) {
    %c0_i32 = arith.constant 0 : i32
    %c0_i32_0 = arith.constant 0 : i32
    %c0_i32_1 = arith.constant 0 : i32
    return %c0_i32, %c0_i32_0 : i32, i32
  }
  func.func @transform_6(%arg0: i32) -> (i32, i32) {
    %c0_i32 = arith.constant 0 : i32
    %c0_i32_0 = arith.constant 0 : i32
    %c0_i32_1 = arith.constant 0 : i32
    return %c0_i32, %c0_i32_0 : i32, i32
  }
  func.func @transform_7(%arg0: i32) -> (i32, i32) {
    %c0_i32 = arith.constant 0 : i32
    %c0_i32_0 = arith.constant 0 : i32
    return %c0_i32, %arg0 : i32, i32
  }
}

</mosaic_0001>

<bundles_post_ra>
// kernel: feedforward_forward.1
= control target key start
LH: loop header
LB: loop body
LE: loop exit
PB: predicated region body
PF: predicated region fallthrough
CT: control target
= control target key end

     0   :  { %vm83_vm0 = vcmask 64512   ;;  %v649_v3 = vmov 0   ;;  %vm277_vm1 = vcmask 523264   ;;  %vm651_vm2 = vmmov 0   ;;  %s817_s0 = inlined_call_operand.vmem [shape: f32[8,128], index: 0, kind: input, shape index: {}]   ;;  %s818_s1 = inlined_call_operand.vmem [shape: f32[64,8], index: 1, kind: input, shape index: {}]   ;;  %s819_s2 = inlined_call_operand.vmem [shape: f32[64,1], index: 2, kind: input, shape index: {}]   ;;  %s820_s4 = inlined_call_operand.vmem [shape: f32[64,1], index: 4, kind: input, shape index: {}]   ;;  %s821_s6 = inlined_call_operand.vmem [shape: f32[8,1], index: 6, kind: input, shape index: {}]   ;;  %s822_s3 = inlined_call_operand.vmem [shape: f32[64,64], index: 3, kind: input, shape index: {}]   ;;  %s823_s5 = inlined_call_operand.vmem [shape: f32[8,64], index: 5, kind: input, shape index: {}]   ;;  %s824_s7 = inlined_call_operand.vmem [shape: f32[8,128], index: 7, kind: output, shape index: {}]  }
   0x1   :  { %v26_v0 = vld [vmem:[%s817_s0] sm:$0xff]  ;;  %v28_v2 = vld [vmem:[%s818_s1 + $0x8] sm:$0xff]  ;;  %615 = vset.pattern.permute.xlu0 %v649_v3  ;;  %616 = vset.pattern.permute.xlu1 %v649_v3  ;;  %v29_v4 = vld [vmem:[%s818_s1 + $0x10] sm:$0xff]  ;;  %v650_v3 = vmov 0.0  }
   0x2   :  { %v27_v1 = vld [vmem:[%s818_s1] sm:$0xff]  ;;  %551 = vmatprep.subr.mxu0 %v26_v0  ;;  %v42_v5 = vld [vmem:[%s819_s2 + $0x38] sm:$0xff]  ;;  %v40_v6 = vld [vmem:[%s819_s2 + $0x28] sm:$0xff] }
   0x3   :  { %553 = vmatprep.mubr.msk.f32.mxu0 %vm83_vm0, %v27_v1  ;;  %552 = vmatpush3.msra.mxu0 %v26_v0  ;;  %v30_v7 = vld [vmem:[%s818_s1 + $0x18] sm:$0xff]  ;;  %v31_v8 = vld [vmem:[%s818_s1 + $0x20] sm:$0xff]  ;;  %v41_v9 = vld [vmem:[%s819_s2 + $0x30] sm:$0xff] }
   0x4   :  { %554 = vmatmul.mubr.msk.f32.vlgmr.msra.gmra.mxu0 %vm83_vm0, %v28_v2  ;;  %80 = vperm.xlu0 %615, %v42_v5   ;;  %v39_v10 = vld [vmem:[%s819_s2 + $0x20] sm:$0xff]  ;;  %v32_v11 = vld [vmem:[%s818_s1 + $0x28] sm:$0xff]  ;;  %v33_v12 = vld [vmem:[%s818_s1 + $0x30] sm:$0xff] }
   0x5   :  { %556 = vmatprep.mubr.msk.f32.mxu0 %vm83_vm0, %v29_v4  ;;  %70 = vperm.xlu1 %616, %v40_v6   ;;  %v38_v13 = vld [vmem:[%s819_s2 + $0x18] sm:$0xff]  ;;  %v37_v14 = vld [vmem:[%s819_s2 + $0x10] sm:$0xff]  ;;  %v36_v16 = vld [vmem:[%s819_s2 + $0x8] sm:$0xff] }
   0x6   :  { %v34_v15 = vld [vmem:[%s818_s1 + $0x38] sm:$0xff]  ;;  %v35_v17 = vld [vmem:[%s819_s2] sm:$0xff]  ;;  %v235_v19 = vld [vmem:[%s820_s4 + $0x30] sm:$0xff]  ;;  %593 = vmatprep.subr.mxu0 %v650_v3 }
   0x7   :  { %v236_v18 = vld [vmem:[%s820_s4 + $0x38] sm:$0xff]  ;;  %v234_v20 = vld [vmem:[%s820_s4 + $0x28] sm:$0xff]  ;;  %v233_v21 = vld [vmem:[%s820_s4 + $0x20] sm:$0xff] }
   0x8   :  { %557 = vmatmul.mubr.msk.f32.gmra.mxu0 %vm83_vm0, %v30_v7  ;;  %75 = vperm.xlu0 %615, %v41_v9   ;;  %v232_v22 = vld [vmem:[%s820_s4 + $0x18] sm:$0xff]  ;;  %v231_v23 = vld [vmem:[%s820_s4 + $0x10] sm:$0xff]  ;;  %v230_v24 = vld [vmem:[%s820_s4 + $0x8] sm:$0xff] }
   0x9   :  { %559 = vmatprep.mubr.msk.f32.mxu0 %vm83_vm0, %v31_v8  ;;  %65 = vperm.xlu1 %616, %v39_v10   ;;  %v229_v25 = vld [vmem:[%s820_s4] sm:$0xff]  ;;  %v222_v60 = vld [vmem:[%s822_s3 + $0x8] sm:$0xff]  ;;  %v223_v61 = vld [vmem:[%s822_s3 + $0x10] sm:$0xff] }
   0xa   :  { %v416_v26 = vld [vmem:[%s821_s6] sm:$0xff]  ;;  %v224_v62 = vld [vmem:[%s822_s3 + $0x18] sm:$0xff]  ;;  %v226_v0 = vld [vmem:[%s822_s3 + $0x28] sm:$0xff] }
   0xb   :  { %v221_v27 = vld [vmem:[%s822_s3] sm:$0xff]  ;;  %v227_v1 = vld [vmem:[%s822_s3 + $0x30] sm:$0xff]  ;;  %v228_v2 = vld [vmem:[%s822_s3 + $0x38] sm:$0xff] }
   0xc   :  { %560 = vmatmul.mubr.msk.f32.gmra.mxu0 %vm83_vm0, %v32_v11  ;;  %60 = vperm.xlu0 %615, %v38_v13   ;;  %v225_v63 = vld [vmem:[%s822_s3 + $0x20] sm:$0xff] }
   0xd   :  { %562 = vmatprep.mubr.msk.f32.mxu0 %vm83_vm0, %v33_v12  ;;  %55 = vperm.xlu1 %616, %v37_v14  }
   0xe   :  { %581 = vmatprep.mubr.msk.f32.mxu1 %vm277_vm1, %v221_v27 }
  0x10   :  { %563 = vmatmul.mubr.msk.f32.gmra.mxu0 %vm83_vm0, %v34_v15  ;;  %50 = vperm.xlu0 %615, %v36_v16  }
  0x11   :  { %45 = vperm.xlu1 %616, %v35_v17   ;;  %609 = vmatprep.mubr.msk.f32.mxu0 %vm651_vm2, %v650_v3 }
  0x14   :  { %274 = vperm.xlu0 %615, %v236_v18  }
  0x15   :  { %269 = vperm.xlu1 %616, %v235_v19  }
  0x18   :  { %264 = vperm.xlu0 %615, %v234_v20  }
  0x19   :  { %259 = vperm.xlu1 %616, %v233_v21  }
  0x1c   :  { %254 = vperm.xlu0 %615, %v232_v22  }
  0x1d   :  { %249 = vperm.xlu1 %616, %v231_v23  }
  0x20   :  { %244 = vperm.xlu0 %615, %v230_v24  }
  0x21   :  { %239 = vperm.xlu1 %616, %v229_v25  }
  0x24   :  { %419 = vperm.xlu0 %615, %v416_v26  }
  0x7f   :  { %v81_v30 = vpop.permute.xlu0 %80 }
  0x80   :  { %v71_v32 = vpop.permute.xlu1 %70 }
  0x83   :  { %v76_v35 = vpop.permute.xlu0 %75 }
  0x84   :  { %v66_v37 = vpop.permute.xlu1 %65 }
  0x87   :  { %v61_v43 = vpop.permute.xlu0 %60 }
  0x88   :  { %v56_v45 = vpop.permute.xlu1 %55 }
  0x8b   :  { %v51_v48 = vpop.permute.xlu0 %50 }
  0x8c   :  { %v46_v50 = vpop.permute.xlu1 %45 }
  0x8f   :  { %v275_v6 = vpop.permute.xlu0 %274 }
  0x90   :  { %v270_v8 = vpop.permute.xlu1 %269 }
  0x93   :  { %v265_v11 = vpop.permute.xlu0 %264 }
  0x94   :  { %v260_v13 = vpop.permute.xlu1 %259 }
  0x97   :  { %v255_v19 = vpop.permute.xlu0 %254 }
  0x98   :  { %v250_v21 = vpop.permute.xlu1 %249 }
  0x9b   :  { %v245_v24 = vpop.permute.xlu0 %244 }
  0x9c   :  { %v240_v26 = vpop.permute.xlu1 %239 }
  0xc4   :  { %v555_v28 = vpop.f32.mrf.mxu0 }
  0xc5   :  { %v180_v49 = vadd.f32 %v555_v28, %v51_v48 }
  0xc6   :  { %v174_v29 = vpop.f32.mrf.mxu0 }
  0xc7   :  { %v175_v51 = vadd.f32 %v174_v29, %v46_v50 }
  0xc8   :  { %v558_v31 = vpop.f32.mrf.mxu0 }
  0xc9   :  { %v190_v46 = vadd.f32 %v558_v31, %v61_v43 }
  0xca   :  { %v184_v33 = vpop.f32.mrf.mxu0 }
  0xcb   :  { %v185_v47 = vadd.f32 %v184_v33, %v56_v45 }
  0xcc   :  { %v561_v34 = vpop.f32.mrf.mxu0 }
  0xcd   :  { %v200_v41 = vadd.f32 %v561_v34, %v71_v32 }
  0xce   :  { %v194_v36 = vpop.f32.mrf.mxu0 }
  0xcf   :  { %v195_v44 = vadd.f32 %v194_v36, %v66_v37  ;;  %v420_v37 = vpop.permute.xlu0 %419 }
  0xd0   :  { %v564_v38 = vpop.f32.mrf.mxu0 }
  0xd1   :  { %v210_v39 = vadd.f32 %v564_v38, %v81_v30 }
  0xd2   :  { %v204_v40 = vpop.f32.mrf.mxu0 }
  0xd3   :  { %617 = vtanh.f32 %v210_v39  ;;  %v205_v42 = vadd.f32 %v204_v40, %v76_v35  ;;  %v415_v35 = vld [vmem:[%s823_s5] sm:$0xff] }
  0xd5   :  { %619 = vtanh.f32 %v205_v42 }
  0xd6   :  { %621 = vtanh.f32 %v200_v41 }
  0xd7   :  { %623 = vtanh.f32 %v195_v44 }
  0xd8   :  { %625 = vtanh.f32 %v190_v46 }
  0xd9   :  { %627 = vtanh.f32 %v185_v47 }
  0xda   :  { %629 = vtanh.f32 %v180_v49 }
  0xdb   :  { %631 = vtanh.f32 %v175_v51 }
  0xe0   :  { %v618_v52 = vpop.eup %617 }
  0xe1   :  { %565 = vmatprep.subr.mxu1 %v618_v52 }
  0xe2   :  { %v620_v53 = vpop.eup %619  ;;  %566 = vmatpush3.msra.mxu1 %v618_v52 }
  0xe3   :  { %567 = vmatprep.subr.mxu1 %v620_v53  ;;  %v622_v54 = vpop.eup %621 }
  0xe4   :  { %568 = vmatpush3.msra.mxu1 %v620_v53  ;;  %v624_v55 = vpop.eup %623 }
  0xe5   :  { %569 = vmatprep.subr.mxu1 %v622_v54  ;;  %v626_v56 = vpop.eup %625 }
  0xe6   :  { %570 = vmatpush3.msra.mxu1 %v622_v54  ;;  %v628_v57 = vpop.eup %627 }
  0xe7   :  { %571 = vmatprep.subr.mxu1 %v624_v55  ;;  %v630_v58 = vpop.eup %629 }
  0xe8   :  { %572 = vmatpush3.msra.mxu1 %v624_v55  ;;  %v632_v59 = vpop.eup %631 }
  0xe9   :  { %573 = vmatprep.subr.mxu1 %v626_v56 }
  0xea   :  { %574 = vmatpush3.msra.mxu1 %v626_v56 }
  0xeb   :  { %575 = vmatprep.subr.mxu1 %v628_v57 }
  0xec   :  { %576 = vmatpush3.msra.mxu1 %v628_v57 }
  0xed   :  { %577 = vmatprep.subr.mxu1 %v630_v58 }
  0xee   :  { %578 = vmatpush3.msra.mxu1 %v630_v58 }
  0xef   :  { %579 = vmatprep.subr.mxu1 %v632_v59 }
  0xf0   :  { %580 = vmatpush3.msra.mxu1 %v632_v59 }
  0xf1   :  { %582 = vmatmul.mubr.msk.f32.vlgmr.msra.gmra.mxu1 %vm277_vm1, %v222_v60 }
  0xf2   :  { %584 = vmatprep.mubr.msk.f32.mxu1 %vm277_vm1, %v223_v61 }
  0xf5   :  { %585 = vmatmul.mubr.msk.f32.gmra.mxu1 %vm277_vm1, %v224_v62 }
  0xf6   :  { %587 = vmatprep.mubr.msk.f32.mxu1 %vm277_vm1, %v225_v63 }
  0xf9   :  { %588 = vmatmul.mubr.msk.f32.gmra.mxu1 %vm277_vm1, %v226_v0 }
  0xfa   :  { %590 = vmatprep.mubr.msk.f32.mxu1 %vm277_vm1, %v227_v1 }
  0xfd   :  { %591 = vmatmul.mubr.msk.f32.gmra.mxu1 %vm277_vm1, %v228_v2 }
 0x1b1   :  { %v583_v4 = vpop.f32.mrf.mxu1 }
 0x1b2   :  { %v374_v25 = vadd.f32 %v583_v4, %v245_v24 }
 0x1b3   :  { %v368_v5 = vpop.f32.mrf.mxu1 }
 0x1b4   :  { %v369_v27 = vadd.f32 %v368_v5, %v240_v26 }
 0x1b5   :  { %v586_v7 = vpop.f32.mrf.mxu1 }
 0x1b6   :  { %v384_v22 = vadd.f32 %v586_v7, %v255_v19 }
 0x1b7   :  { %v378_v9 = vpop.f32.mrf.mxu1 }
 0x1b8   :  { %v379_v23 = vadd.f32 %v378_v9, %v250_v21 }
 0x1b9   :  { %v589_v10 = vpop.f32.mrf.mxu1 }
 0x1ba   :  { %v394_v17 = vadd.f32 %v589_v10, %v265_v11 }
 0x1bb   :  { %v388_v12 = vpop.f32.mrf.mxu1 }
 0x1bc   :  { %v389_v20 = vadd.f32 %v388_v12, %v260_v13 }
 0x1bd   :  { %v592_v14 = vpop.f32.mrf.mxu1 }
 0x1be   :  { %v404_v15 = vadd.f32 %v592_v14, %v275_v6 }
 0x1bf   :  { %v398_v16 = vpop.f32.mrf.mxu1 }
 0x1c0   :  { %633 = vtanh.f32 %v404_v15  ;;  %v399_v18 = vadd.f32 %v398_v16, %v270_v8 }
 0x1c2   :  { %635 = vtanh.f32 %v399_v18 }
 0x1c3   :  { %637 = vtanh.f32 %v394_v17 }
 0x1c4   :  { %639 = vtanh.f32 %v389_v20 }
 0x1c5   :  { %641 = vtanh.f32 %v384_v22 }
 0x1c6   :  { %643 = vtanh.f32 %v379_v23 }
 0x1c7   :  { %645 = vtanh.f32 %v374_v25 }
 0x1c8   :  { %647 = vtanh.f32 %v369_v27 }
 0x1cd   :  { %v634_v28 = vpop.eup %633 }
 0x1ce   :  { %594 = vmatpush3.msra.mxu0 %v634_v28 }
 0x1cf   :  { %v636_v29 = vpop.eup %635  ;;  %595 = vmatprep.subr.mxu0 %v650_v3 }
 0x1d0   :  { %596 = vmatpush3.msra.mxu0 %v636_v29  ;;  %v638_v30 = vpop.eup %637 }
 0x1d1   :  { %597 = vmatprep.subr.mxu0 %v650_v3  ;;  %v640_v31 = vpop.eup %639 }
 0x1d2   :  { %598 = vmatpush3.msra.mxu0 %v638_v30  ;;  %v642_v32 = vpop.eup %641 }
 0x1d3   :  { %599 = vmatprep.subr.mxu0 %v650_v3  ;;  %v644_v33 = vpop.eup %643 }
 0x1d4   :  { %600 = vmatpush3.msra.mxu0 %v640_v31  ;;  %v646_v34 = vpop.eup %645 }
 0x1d5   :  { %601 = vmatprep.subr.mxu0 %v650_v3  ;;  %v648_v36 = vpop.eup %647 }
 0x1d6   :  { %602 = vmatpush3.msra.mxu0 %v642_v32 }
 0x1d7   :  { %603 = vmatprep.subr.mxu0 %v650_v3 }
 0x1d8   :  { %604 = vmatpush3.msra.mxu0 %v644_v33 }
 0x1d9   :  { %605 = vmatprep.subr.mxu0 %v650_v3 }
 0x1da   :  { %606 = vmatpush3.msra.mxu0 %v646_v34 }
 0x1db   :  { %607 = vmatprep.subr.mxu0 %v650_v3 }
 0x1dc   :  { %608 = vmatpush3.msra.mxu0 %v648_v36 }
 0x1dd   :  { %610 = vmatmul.mubr.msk.f32.vlgmr.msra.gmra.mxu0 %vm277_vm1, %v415_v35 }
 0x29d   :  { %v491_v38 = vpop.f32.mrf.mxu0 }
 0x29e   :  { %v492_v39 = vadd.f32 %v491_v38, %v420_v37 }
 0x29f   :  { %v611_v40 = vpop.f32.mrf.mxu0 }
 0x2a0   :  { %495 = vst [vmem:[%s824_s7] sm:$0xff] %v492_v39 }

</bundles_post_ra>
